<compile_context>
chip_gen: v7x
topology: tpu7x:2x2x1
jax: 0.10.0
libtpu: 0.0.40
codegen_flags: <defaults>
</compile_context>

<pallas_src>
import jax
import jax.numpy as jnp
from jax.experimental import pallas as pl
from jax.experimental.pallas import tpu as pltpu


def _conv_bn_relu_kernel(x_ref, w_ref, b_ref, o_ref):
    # x_ref: (Cin, T)     one spatial tile of one batch element (batch dim squeezed)
    # w_ref: (TCout, Cin) 1x1 conv weight with eval-mode BatchNorm folded in (bf16)
    # b_ref: (TCout, 1)   folded bias (f32)
    # o_ref: (TCout, T)
    x = x_ref[...].astype(jnp.bfloat16)        # bf16 MXU operand (cast in-kernel, free)
    w = w_ref[...]                             # already bf16
    # 1x1 conv (+ folded BN) as a single 2-D matmul; lane dim = T (dense, mult. of 128).
    y = jnp.dot(w, x, preferred_element_type=jnp.float32)   # (TCout, T) f32 accumulate
    y = y + b_ref[...]                         # bias broadcast along lanes (f32 VPU)
    o_ref[...] = jnp.maximum(y, 0.0).astype(o_ref.dtype)    # ReLU epilogue


def _pick_tiles(hw, cin, cout, in_bytes, out_bytes,
                target_block_bytes=2 * 1024 * 1024):
    """Byte-budget-aware (T, TCout) tile selection.

    T is a multiple of 128 (lane-dense) sized so the per-step x+out block is ~2 MiB;
    the ragged last spatial tile is handled by a cdiv grid (masked by Pallas).
    Cout is tiled only when large, to bound the resident weight + f32 output block.
    """
    # Cout tile.
    if cout >= 512:
        tco = 256
    else:
        tco = cout

    # Spatial tile.
    if hw <= 128:
        return hw, tco                      # full-extent block (legal, single tile)
    per_lane = cin * in_bytes + tco * out_bytes
    t = (target_block_bytes // per_lane) // 128 * 128
    t = max(128, min(t, 8 * 1024))          # lane-dense but bounded
    t = min(t, (hw // 128) * 128)           # block never exceeds the array extent
    return int(t), int(tco)


def conv_batchnorm_1x1_pallas(x_nchw, conv_w, conv_b,
                              bn_gamma, bn_beta, bn_mean, bn_var, bn_eps=1e-5):
    """x_nchw: [N, Cin, H, W]. Returns [N, Cout, H, W] (same dtype as input)."""
    N, Cin, H, W = x_nchw.shape
    Cout = conv_w.shape[0]
    HW = H * W

    in_bytes = jnp.dtype(x_nchw.dtype).itemsize
    out_bytes = in_bytes                       # output dtype follows input dtype

    # Fold BatchNorm (eval mode) into the 1x1 conv.
    s = bn_gamma / jnp.sqrt(bn_var + bn_eps)                                # [Cout]
    w_fold = (conv_w.reshape(Cout, Cin) * s[:, None]).astype(jnp.bfloat16)  # [Cout, Cin]
    b_fold = ((conv_b - bn_mean) * s + bn_beta).reshape(Cout, 1).astype(jnp.float32)

    # Free reshape (NCHW stays contiguous): spatial axis goes to lanes.
    x2 = x_nchw.reshape(N, Cin, HW)

    T, TCout = _pick_tiles(HW, Cin, Cout, in_bytes, out_bytes)
    n_sp = pl.cdiv(HW, T)
    n_co = pl.cdiv(Cout, TCout)
    grid = (N, n_co, n_sp)

    # VMEM budget for the chosen blocks (double-buffered x/out + weight/bias blocks).
    block_bytes = (Cin * T * in_bytes + TCout * T * out_bytes) * 2
    block_bytes += (TCout * Cin * 2) * 2 + (TCout * 4) * 2
    vmem_limit = int(min(max(2 * block_bytes + (4 << 20), 32 << 20), 64 << 20))

    cost = pl.CostEstimate(
        flops=2 * N * HW * Cin * Cout,
        bytes_accessed=N * HW * (Cin * in_bytes + Cout * out_bytes)
        + Cout * Cin * 2 + Cout * 4,
        transcendentals=0,
    )

    out = pl.pallas_call(
        _conv_bn_relu_kernel,
        out_shape=jax.ShapeDtypeStruct((N, Cout, HW), x_nchw.dtype),
        grid_spec=pl.GridSpec(
            grid=grid,
            in_specs=[
                # Batch dim squeezed -> kernel sees 2-D (Cin, T) / (TCout, T) refs.
                pl.BlockSpec((None, Cin, T), lambda n, co, sp: (n, 0, sp)),
                pl.BlockSpec((TCout, Cin), lambda n, co, sp: (co, 0)),
                pl.BlockSpec((TCout, 1), lambda n, co, sp: (co, 0)),
            ],
            out_specs=pl.BlockSpec((None, TCout, T), lambda n, co, sp: (n, co, sp)),
        ),
        compiler_params=pltpu.CompilerParams(
            # All axes independent -> fully pipelined and megacore-shardable
            # (v7x 2 TCs), even at N == 1.
            dimension_semantics=("parallel", "parallel", "parallel"),
            vmem_limit_bytes=vmem_limit,
        ),
        cost_estimate=cost,
    )(x2, w_fold, b_fold)

    return out.reshape(N, Cout, H, W)


def _reference(x, conv_w, conv_b, bn_gamma, bn_beta, bn_mean, bn_var, bn_eps=1e-5):
    """Plain-JAX f32 reference with the PyTorch module semantics (eval-mode BN)."""
    Cout, Cin = conv_w.shape[:2]
    y = jnp.einsum('nchw,dc->ndhw', x.astype(jnp.float32), conv_w.reshape(Cout, Cin))
    y = y + conv_b[None, :, None, None]
    s = bn_gamma / jnp.sqrt(bn_var + bn_eps)
    y = (y - bn_mean[None, :, None, None]) * s[None, :, None, None] \
        + bn_beta[None, :, None, None]
    return jnp.maximum(y, 0.0)


if __name__ == "__main__":
    key = jax.random.PRNGKey(0)
    k_x, k_w, k_b, k_g, k_be, k_m, k_v = jax.random.split(key, 7)

    # ConvBatchNorm_1x1(in_channels=4, out_channels=8) on a [2, 4, 16, 16] input.
    N, Cin, H, W = 2, 4, 16, 16
    Cout = 8

    x = jax.random.normal(k_x, (N, Cin, H, W), dtype=jnp.float32)
    conv_w = jax.random.normal(k_w, (Cout, Cin, 1, 1), dtype=jnp.float32) * 0.1
    conv_b = jax.random.normal(k_b, (Cout,), dtype=jnp.float32) * 0.1
    bn_gamma = 1.0 + 0.1 * jax.random.normal(k_g, (Cout,), dtype=jnp.float32)
    bn_beta = 0.1 * jax.random.normal(k_be, (Cout,), dtype=jnp.float32)
    bn_mean = 0.1 * jax.random.normal(k_m, (Cout,), dtype=jnp.float32)
    bn_var = jax.random.uniform(k_v, (Cout,), dtype=jnp.float32,
                                minval=0.5, maxval=1.5)

    out = conv_batchnorm_1x1_pallas(x, conv_w, conv_b,
                                    bn_gamma, bn_beta, bn_mean, bn_var)
    out = jax.block_until_ready(out)

    ref = _reference(x, conv_w, conv_b, bn_gamma, bn_beta, bn_mean, bn_var)

    assert out.shape == (N, Cout, H, W)
    # bf16 MXU operands (f32 accumulation) => loosen tolerance vs. the pure-f32 reference.
    assert jnp.allclose(out, ref, atol=5e-2, rtol=5e-2), \
        f"max abs err {float(jnp.max(jnp.abs(out - ref)))}"

    print("KERNEL_OK")
</pallas_src>

<mosaic_0001>
module attributes {stable_mosaic.version = 11 : i64} {
  func.func @_conv_bn_relu_kernel(%arg0: i32, %arg1: i32, %arg2: i32, %arg3: memref<1x4x256xf32, #tpu.memory_space<vmem>>, %arg4: memref<8x4xbf16, #tpu.memory_space<vmem>>, %arg5: memref<8x1xf32, #tpu.memory_space<vmem>>, %arg6: memref<1x8x256xf32, #tpu.memory_space<vmem>>) attributes {dimension_semantics = [#tpu.dimension_semantics<parallel>, #tpu.dimension_semantics<parallel>, #tpu.dimension_semantics<parallel>], iteration_bounds = array<i64: 2, 1, 1>, scalar_prefetch = 0 : i64, scratch_operands = 0 : i64, tpu.core_type = #tpu.core_type<tc>, window_params = [{transform_indices = @transform_0, window_bounds = array<i64: 1, 4, 256>}, {transform_indices = @transform_1, window_bounds = array<i64: 8, 4>}, {transform_indices = @transform_2, window_bounds = array<i64: 8, 1>}, {transform_indices = @transform_3, window_bounds = array<i64: 1, 8, 256>}]} {
    %c0 = arith.constant 0 : index
    %c0_0 = arith.constant 0 : index
    %c0_1 = arith.constant 0 : index
    %0 = vector.load %arg3[%c0, %c0_0, %c0_1] : memref<1x4x256xf32, #tpu.memory_space<vmem>>, vector<1x4x256xf32>
    %1 = vector.shape_cast %0 : vector<1x4x256xf32> to vector<4x256xf32>
    %2 = arith.truncf %1 : vector<4x256xf32> to vector<4x256xbf16>
    %c0_2 = arith.constant 0 : index
    %c0_3 = arith.constant 0 : index
    %3 = vector.load %arg4[%c0_2, %c0_3] : memref<8x4xbf16, #tpu.memory_space<vmem>>, vector<8x4xbf16>
    %cst = arith.constant dense<0.000000e+00> : vector<8x256xf32>
    %4 = tpu.matmul %3, %2, %cst {dimension_numbers = #tpu.dot_dimension_numbers<[1], [0], [0], [1], [0, 0, 1, 1], [], []>} : vector<8x4xbf16>, vector<4x256xbf16>, vector<8x256xf32> -> vector<8x256xf32>
    %c0_4 = arith.constant 0 : index
    %c0_5 = arith.constant 0 : index
    %5 = vector.load %arg5[%c0_4, %c0_5] : memref<8x1xf32, #tpu.memory_space<vmem>>, vector<8x1xf32>
    %6 = vector.broadcast %5 : vector<8x1xf32> to vector<8x256xf32>
    %7 = arith.addf %4, %6 : vector<8x256xf32>
    %cst_6 = arith.constant 0.000000e+00 : f32
    %8 = vector.broadcast %cst_6 : f32 to vector<8x256xf32>
    %9 = arith.maximumf %7, %8 : vector<8x256xf32>
    %c0_7 = arith.constant 0 : index
    %c0_8 = arith.constant 0 : index
    %c0_9 = arith.constant 0 : index
    %10 = vector.load %arg6[%c0_7, %c0_8, %c0_9] : memref<1x8x256xf32, #tpu.memory_space<vmem>>, vector<1x8x256xf32>
    %11 = vector.shape_cast %10 : vector<1x8x256xf32> to vector<8x256xf32>
    %12 = vector.shape_cast %9 : vector<8x256xf32> to vector<1x8x256xf32>
    tpu.vector_store %arg6[%c0_7, %c0_8, %c0_9], %12 {strides = array<i32>} : memref<1x8x256xf32, #tpu.memory_space<vmem>>, vector<1x8x256xf32>,
    return
  }
  func.func @transform_0(%arg0: i32, %arg1: i32, %arg2: i32) -> (i32, i32, i32) {
    %c0_i32 = arith.constant 0 : i32
    %c0_i32_0 = arith.constant 0 : i32
    return %arg0, %c0_i32, %arg2 : i32, i32, i32
  }
  func.func @transform_1(%arg0: i32, %arg1: i32, %arg2: i32) -> (i32, i32) {
    %c0_i32 = arith.constant 0 : i32
    %c0_i32_0 = arith.constant 0 : i32
    return %arg1, %c0_i32 : i32, i32
  }
  func.func @transform_2(%arg0: i32, %arg1: i32, %arg2: i32) -> (i32, i32) {
    %c0_i32 = arith.constant 0 : i32
    %c0_i32_0 = arith.constant 0 : i32
    return %arg1, %c0_i32 : i32, i32
  }
  func.func @transform_3(%arg0: i32, %arg1: i32, %arg2: i32) -> (i32, i32, i32) {
    %c0_i32 = arith.constant 0 : i32
    return %arg0, %arg1, %arg2 : i32, i32, i32
  }
}

</mosaic_0001>

<bundles_post_ra>
// kernel: tpu_custom_call.1
= control target key start
LH: loop header
LB: loop body
LE: loop exit
PB: predicated region body
PF: predicated region fallthrough
CT: control target
= control target key end

     0   :  { %8 = vsyncpa [#allocation3], 0  ;;  %s860_s0 = inlined_call_operand.hbm [shape: f32[2,4,256], index: 0, kind: input, shape index: {}]   ;;  %s861_s1 = inlined_call_operand.vmem [shape: bf16[8,4], index: 1, kind: input, shape index: {}]   ;;  %s862_s2 = inlined_call_operand.vmem [shape: f32[8,1], index: 2, kind: input, shape index: {}]   ;;  %s863_s3 = inlined_call_operand.hbm [shape: f32[2,8,256], index: 3, kind: output, shape index: {}]  }
   0x1   :  { %10 = vsyncpa [#allocation3 + $0x1], 0 }
   0x2   :  { %11 = vsyncpa [#allocation4], 0 }
   0x3   :  { %13 = vsyncpa [#allocation4 + $0x1], 0  ;;  %s681_s12 = smov 0   ;;  %s683_s13 = smov 0  }
   0x4   :  { %s685_s14 = smov 0   ;;  %s687_s15 = smov 0  }
   0x5   :  { %s689_s16 = smov 0   ;;  %s691_s17 = smov 0  }
   0x6 LB: > { %s458_s18 = sadd.s32 4294967295, %s656_s17   ;;  %s459_s19 = sadd.s32 4294967294, %s656_s17   ;;  %s656_s17 = sphi %s691_s17, %s19_s17   ;;  %s652_s16 = sphi %s689_s16, %s879_s16   ;;  %s648_s15 = sphi %s687_s15, %s878_s15   ;;  %s644_s14 = sphi %s685_s14, %s877_s14   ;;  %s640_s13 = sphi %s683_s13, %s876_s13   ;;  %s636_s12 = sphi %s681_s12, %s875_s12  }
   0x7   : > { %s38_s20 = sadd.s32 1, %s652_s16  ;;  %s47_s21 = sadd.s32 1, %s644_s14 }
   0x8   : > { %p40_p0 = scmp.ge.s32.totalorder %s38_s20, 2  ;;  %p54_p1 = scmp.ne.s32.totalorder %s644_s14, %s640_s13 }
   0x9   : > { %p55_p2 = scmp.eq.s32.totalorder %s656_s17, 0  ;;  %p60_p3 = scmp.ne.s32.totalorder %s640_s13, %s636_s12 }
   0xa   : > { %s881_s20 = smov (%p40_p0, %s38_s20), 0  ;;  %p61_p5 = scmp.eq.s32.totalorder %s458_s18, 0 }
   0xb   : > { %p722_p4 = por %p55_p2, %p54_p1  ;;  %s42_s23 = ssub.s32 %s652_s16, %s881_s20 }
   0xc   : > { %p140_p6 = scmp.eq.s32.totalorder %s458_s18, 1  ;;  %p45_p7 = scmp.eq.s32.totalorder %s42_s23, 0 }
   0xd   : > { %p728_p8 = por %p61_p5, %p60_p3  ;;  %p146_p10 = scmp.eq.s32.totalorder %s459_s19, 1 }
   0xe   : > { %p732_p9 = por %p140_p6, %p54_p1  ;;  %p491_p13 = scmp.lt.s32.totalorder %s656_s17, 2 }
   0xf   : > { %s737_s26 = scalar_select %p45_p7, %s644_s14, %s47_s21  }
  0x10   : > { %s867_s25 = scalar_select %p732_p9, 1, 0 }
  0x11   : > { %p739_p11 = por %p146_p10, %p60_p3  ;;  %s180_s28 = sand.u32 1, %s644_s14  }
  0x12   : > { %s464_s29 = sshll.u32 %s180_s28, 3  ;;  %s477_s30 = sshll.u32 %s652_s16, 7 }
  0x13   : > { %s868_s27 = scalar_select %p739_p11, 1, 0 }
  0x14   : > { %s750_s6 = scalar_lea.hbm %s860_s0, %s477_s30  ;;  %s184_s7 = scalar_lea.vmem [#allocation2], %s464_s29 }
  0x15   : > { %s194_s8 = sshll.u32 %s184_s7, 4  ;;  %p756_p0 = pnand %p491_p13, %p722_p4  ;;  %s752_s8 = int_to_ptr.vmem [resolvable:$true] %s194_s8 }
  0x16   : > { %s181_s10 = scalar_lea.sflag [#allocation3], %s180_s28  ;;  %s544_s11 = scalar_lea.hbm %s750_s6, 128 }
  0x17   : > { %p545_p3 = scmp.ne.s32.totalorder %s750_s6, %s544_s11  ;;  %p546_p5 = pneg %p756_p0 }
  0x18   : > { %s549_s21 = scalar_lea.hbm %s860_s0, 256  ;;  %p550_p4 = scmp.lt.u32.totalorder %s750_s6, %s860_s0 }
  0x19   : > { %p547_p6 = pnand %p546_p5, %p545_p3  ;;  %p551_p10 = scmp.lt.u32.totalorder %s549_s21, %s544_s11 }
  0x1a   : > { %p553_p12 = scmp.lt.u32.totalorder %s544_s11, %s750_s6 }
  0x1b   : > { %p548_p7 = pneg %p547_p6  ;;  %p552_p13 = por %p551_p10, %p550_p4 }
  0x1d   : > { %p554_p1 = por %p553_p12, %p552_p13 }
  0x1f   : > { %p555_p2 = pnand %p554_p1, %p548_p7 }
  0x21   : > { %558 = shalt.err (!%p555_p2)
}
  0x22   : > { %s559_s28 = scalar_lea.vmem %s752_s8, 128  ;;  %s658_s29 = smov [#allocation2]  }
  0x23   : > { %p560_p3 = scmp.ne.s32.totalorder %s752_s8, %s559_s28  ;;  %s564_s30 = sshll.u32 %s658_s29, 4  ;;  %s565_s30 = int_to_ptr.vmem [resolvable:$false] %s564_s30 }
  0x24   : > { %s566_s4 = scalar_lea.vmem %s565_s30, 256  ;;  %p567_p9 = scmp.lt.s32.totalorder %s752_s8, %s565_s30 }
  0x25   : > { %p562_p6 = pnand %p560_p3, %p546_p5  ;;  %p568_p4 = scmp.lt.s32.totalorder %s566_s4, %s559_s28 }
  0x27   : > { %p563_p11 = pneg %p562_p6  ;;  %p569_p10 = por %p568_p4, %p567_p9 }
  0x29   : > { %p570_p12 = pnand %p569_p10, %p563_p11 }
  0x2b   : > { %573 = shalt.err (!%p570_p12)
}
  0x2c   : > { %486 = dma.hbm_to_vmem [thread:$0]  (!%p756_p0), %s750_s6, 128, %s752_s8, %s181_s10  }
  0x2d   : > { %p870_p1 = scmp.lt.s32.totalorder %s656_s17, 3  ;;  %p871_p2 = scmp.ge.s32.totalorder %s656_s17, 1 }
  0x2f   : > { %p200_p5 = pnand %p871_p2, %p870_p1 }
  0x30   : > { %s792_s5 = sand.u32 (!%p200_p5), 1, %s640_s13  }
  0x31   : > { %203 = sbr.rel (%p200_p5) target bundleno = 297 (0x129), region = 32  ;;  %s468_s7 = sshll.u32 (!%p200_p5), %s792_s5, 3 }
  0x32   : > { %s206_s11 = scalar_lea.sflag (!%p200_p5), [#allocation3], %s792_s5  ;;  %s209_s18 = scalar_lea.vmem (!%p200_p5), [#allocation2], %s468_s7 }
  0x38   : > { %627 = dma.done.wait (%p728_p8), %s206_s11, 128  }
  0x39   : > { %629 = vsyncadd (%p728_p8), %s206_s11, 4294967168  ;;  %v659_v0 = vmov 0   ;;  %v251_v1 = vld [vmem:[%s209_s18] sm:$0xff]  ;;  %vm268_vm0 = vcmask 1041408   ;;  %vm264_vm1 = vcmask 31744   ;;  %s469_s10 = sshll.u32 %s792_s5, 4 }
  0x3a   : > { %307 = vmatprep.mubr.bf16.mxu0 %v659_v0  ;;  %542 = vset.pattern.permute.xlu0 %v659_v0  ;;  %v258_v2 = vld [vmem:[%s862_s2] sm:$0xff]  ;;  %v253_v3 = vcombine.high %v251_v1, %v251_v1  ;;  %v255_v4 = vpack.c.bf16 %v251_v1, %v251_v1  ;;  %s478_s19 = sshll.u32 %s648_s15, 8  ;;  %s239_s21 = scalar_lea.vmem [#allocation5], %s469_s10 }
  0x3b   : > { %261 = vperm.xlu0 %542, %v258_v2   ;;  %v257_v7 = vld [vmem:[%s861_s1] sm:$0xf]  ;;  %s339_s22 = sshll.u32 %s239_s21, 4  ;;  %s811_s29 = scalar_lea.hbm %s863_s3, %s478_s19  ;;  %s813_s22 = int_to_ptr.vmem [resolvable:$true] %s339_s22 }
  0x3c   : > { %v256_v5 = vpack.c.bf16 %v253_v3, %v253_v3  ;;  %v270_v6 = vsel %vm268_vm0, %v255_v4, 0  ;;  %s321_s15 = scalar_lea.sflag [#allocation4], %s792_s5  ;;  %s574_s30 = scalar_lea.vmem %s813_s22, 256 }
  0x3d   : > { %p575_p8 = scmp.ne.s32.totalorder %s813_s22, %s574_s30  ;;  %p872_p9 = scmp.ne.s32.totalorder %s867_s25, 0 }
  0x3e   : > { %470 = vmatprep.subr.msk.bf16.mxu0 %vm268_vm0, %v256_v5  ;;  %s660_s4 = smov [#allocation5]  }
  0x3f   : > { %276 = vmatpush1.bf16.msra.mxu0 %v270_v6  ;;  %p576_p11 = pnand %p575_p8, %p872_p9  ;;  %s578_s7 = sshll.u32 %s660_s4, 4  ;;  %s579_s7 = int_to_ptr.vmem [resolvable:$false] %s578_s7 }
  0x40   : > { %s580_s11 = scalar_lea.vmem %s579_s7, 512  ;;  %p581_p7 = scmp.lt.s32.totalorder %s813_s22, %s579_s7 }
  0x41   : > { %p577_p0 = pneg %p576_p11  ;;  %p582_p13 = scmp.lt.s32.totalorder %s580_s11, %s574_s30 }
  0x42   : > { %471 = vmatmul.mubr.msk.bf16.vlgmr.msra.gmra.mrb[0].mxu0 %vm264_vm1, %v257_v7 }
  0x43   : > { %p583_p3 = por %p582_p13, %p581_p7 }
  0x45   : > { %p584_p6 = pnand %p583_p3, %p577_p0 }
  0xba   : > { %v262_v8 = vpop.permute.xlu0 %261 }
 0x115   : > { %v309_v9 = vpop.f32.mrb[0].mxu0 }
 0x116   : > { %v310_v10 = vadd.f32 %v309_v9, %v262_v8  ;;  %v311_v11 = vpop.f32.mrb[1].mxu0 }
 0x117   : > { %v312_v12 = vadd.f32 %v311_v11, %v262_v8  ;;  %v313_v13 = vpop.f32.mrb[2].mxu0 }
 0x118   : > { %v316_v14 = vmax.f32 %v310_v10, 0.0  ;;  %v314_v15 = vpop.f32.mrb[3].mxu0 }
 0x119   : > { %v317_v16 = vmax.f32 %v312_v12, 0.0 }
 0x11a   : > { %318 = vst [vmem:[%s239_s21] sm:$0xff] %v316_v14 }
 0x11b   : > { %319 = vst [vmem:[%s239_s21 + $0x8] sm:$0xff] %v317_v16 }
 0x11c   : > { %587 = shalt.err (!%p584_p6)
}
 0x11d   : > { %s588_s5 = scalar_lea.hbm %s811_s29, 256  ;;  %s592_s8 = scalar_lea.hbm %s863_s3, 512 }
 0x11e   : > { %p589_p4 = scmp.ne.s32.totalorder %s811_s29, %s588_s5  ;;  %p593_p1 = scmp.lt.u32.totalorder %s811_s29, %s863_s3 }
 0x11f   : > { %p594_p2 = scmp.lt.u32.totalorder %s592_s8, %s588_s5  ;;  %p596_p8 = scmp.lt.u32.totalorder %s588_s5, %s811_s29 }
 0x120   : > { %p590_p10 = pnand %p589_p4, %p872_p9 }
 0x121   : > { %p595_p5 = por %p594_p2, %p593_p1 }
 0x122   : > { %p591_p12 = pneg %p590_p10 }
 0x123   : > { %p597_p11 = por %p596_p8, %p595_p5 }
 0x125   : > { %p598_p0 = pnand %p597_p11, %p591_p12 }
 0x127   : > { %601 = shalt.err (!%p598_p0)
}
 0x128   : > { %481 = dma.vmem_to_hbm [thread:$0]  (%p872_p9), %s813_s22, 256, %s811_s29, %s321_s15  }
 0x129 PF: > { %s351_s10 = sand.u32 1, %s636_s12   ;;  %p873_p7 = scmp.ne.s32.totalorder %s868_s27, 0 }
 0x12a   : > { %p874_p13 = scmp.ge.s32.totalorder %s656_s17, 2  ;;  %s352_s19 = scalar_lea.sflag [#allocation4], %s351_s10 }
 0x12c   : > { %p488_p3 = pnand %p874_p13, %p873_p7 }
 0x12e   : > { %631 = dma.done.wait (!%p488_p3), %s352_s19, 256  }
 0x12f   : > { %633 = vsyncadd (!%p488_p3), %s352_s19, 4294967040  ;;  %s19_s17 = sadd.s32 1, %s656_s17   ;;  %s875_s12 = smov %s640_s13 }
 0x130   : > { %p16_p6 = scmp.ge.s32.totalorder %s19_s17, 4   ;;  %s876_s13 = smov %s644_s14 }
 0x131   : > { %s877_s14 = smov %s737_s26  ;;  %s878_s15 = smov %s652_s16 }
 0x132   : > { %s879_s16 = smov %s881_s20  ;;  %18 = sbr.rel (!%p16_p6) target bundleno = 6 (0x6), region = 83 }
 0x139   :  { %357 = vsyncpa [#allocation3], 1 }
 0x13a   :  { %359 = vsyncpa [#allocation3 + $0x1], 1 }
 0x13b   :  { %360 = vsyncpa [#allocation4], 1 }
 0x13c   :  { %362 = vsyncpa [#allocation4 + $0x1], 1 }

</bundles_post_ra>
